<compile_context>
chip_gen: v6e
topology: v6e:2x2x1
jax: 0.10.0
libtpu: 0.0.40
codegen_flags: <defaults>
</compile_context>

<pallas_src>
import functools

import jax
import jax.numpy as jnp
from jax import lax
from jax.experimental import pallas as pl
from jax.experimental.pallas import tpu as pltpu


def _normal_conv_kernel(x_ref, w_ref, o_ref, p_ref,
                        *, H, W, KH, KW, N, Cin, Cout, KP):
    """Single grid step for the whole batch.

    x_ref : (N*Cin, H*W)        input planes, spatial flattened on lanes
    w_ref : (2*N*Cout, KP)      block-diag fused conv weights (+ bias column)
    o_ref : (2*N*Cout, H*W)     fused output: rows [mu(all n) ; sigma(all n)]
    p_ref : (KP, H*W) f32       im2col scratch (taps*batch*cin rows + bias/pad)
    """
    HW = H * W
    NC = N * Cin
    T = KH * KW
    base = T * NC
    ph, pw = (KH - 1) // 2, (KW - 1) // 2

    x = x_ref[...]                                          # (NC, HW)

    # Lane-position / column iotas, hoisted (built once, full shape -> no
    # sublane broadcast needed when masking).
    pos = lax.broadcasted_iota(jnp.int32, (NC, HW), 1)
    if (W & (W - 1)) == 0:
        col = pos & (W - 1)
    else:
        col = pos % W

    # Hoisted column masks (shared across kh; only KW distinct dw values).
    col_masks = {}
    for kw in range(KW):
        dw = kw - pw
        if dw < 0:
            col_masks[dw] = col >= -dw
        elif dw > 0:
            col_masks[dw] = col < (W - dw)
        else:
            col_masks[dw] = None

    # im2col fill: one masked lane-roll per tap, shared by both heads and the
    # whole batch (shift/mask are batch-independent); 8-sublane-aligned stores.
    for kh in range(KH):
        dh = kh - ph
        for kw in range(KW):
            dw = kw - pw
            delta = dh * W + dw
            t = kh * KW + kw

            if delta == 0:
                shifted = x
            else:
                # shifted[:, p] = x[:, (p + delta) % HW]  (wraps; masked below)
                shifted = pltpu.roll(x, (-delta) % HW, axis=1)

            conds = []
            cm = col_masks[dw]
            if cm is not None:
                conds.append(cm)                            # column in range
            if delta < 0:
                conds.append(pos >= -delta)                 # p+delta >= 0
            elif delta > 0:
                conds.append(pos < (HW - delta))            # p+delta < HW
            if conds:
                m = functools.reduce(jnp.logical_and, conds)
                shifted = jnp.where(m, shifted, jnp.zeros_like(shifted))

            p_ref[t * NC:(t + 1) * NC, :] = shifted.astype(jnp.float32)

    # Tail tile: one ones-row (bias) + zero padding rows (match zero weight
    # columns so no garbage reaches the MXU).
    tail_rows = KP - base
    tail = (lax.broadcasted_iota(jnp.int32, (tail_rows, HW), 0) == 0)
    p_ref[base:KP, :] = tail.astype(jnp.float32)

    # Both convolutions, both batch elements, bias included: ONE MXU matmul.
    acc = jnp.dot(w_ref[...].astype(jnp.float32), p_ref[...],
                  preferred_element_type=jnp.float32)       # (2*N*Cout, HW)

    half = N * Cout
    o_ref[:half, :] = acc[:half, :].astype(o_ref.dtype)                 # loc
    o_ref[half:, :] = jnp.exp(acc[half:, :]).astype(o_ref.dtype)        # scale (EUP)


def normal_distribution_conv_layer(x_nchw, w_mean, b_mean, w_logscale, b_logscale):
    """Fused forward pass of NormalDistributionConvLayer.

    Args:
      x_nchw     : (N, Cin, H, W)       float32 (PyTorch NCHW)
      w_mean     : (Cout, Cin, KH, KW)  float32 (PyTorch OIHW)
      b_mean     : (Cout,)              float32
      w_logscale : (Cout, Cin, KH, KW)  float32
      b_logscale : (Cout,)              float32
    Returns:
      (loc, scale), each (N, Cout, H, W) — parameters of Normal(loc, scale).
    """
    N, Cin, H, W = x_nchw.shape
    Cout, _, KH, KW = w_mean.shape
    HW = H * W
    T = KH * KW
    NC = N * Cin
    base = T * NC                    # im2col rows carrying real data
    KP = base + 8                    # + bias row, padded to an 8-row tail tile
    M = 2 * N * Cout                 # fused output rows: [mu(all n) ; sigma(all n)]

    # Free, contiguous reshape — no transpose, no pad.
    x_flat = x_nchw.reshape(NC, HW)

    # --- tiny one-time weight prep (a few hundred floats) -------------------
    # Per-tap weights: w_taps[t, s, o, c] = w_s[o, c, kh, kw],  t = kh*KW + kw.
    w_stack = jnp.stack([w_mean, w_logscale], axis=0)             # (2,Cout,Cin,KH,KW)
    w_taps = jnp.transpose(w_stack, (3, 4, 0, 1, 2)).reshape(T, 2, Cout, Cin)
    # Block-diagonal over the batch: W[(s,n,o),(t,m,c)] = w_taps[t,s,o,c]*(n==m)
    eye_n = jnp.eye(N, dtype=w_taps.dtype)
    w_big = jnp.einsum('nm,tsoc->snotmc', eye_n, w_taps).reshape(M, base)
    # Bias column (multiplies the ones-row of P).
    b_stack = jnp.stack([b_mean, b_logscale], axis=0)             # (2, Cout)
    bias_col = jnp.broadcast_to(b_stack[:, None, :], (2, N, Cout)).reshape(M, 1)
    w_full = jnp.concatenate(
        [w_big, bias_col, jnp.zeros((M, KP - base - 1), w_big.dtype)], axis=1)  # (M, KP)

    kernel = functools.partial(_normal_conv_kernel,
                               H=H, W=W, KH=KH, KW=KW,
                               N=N, Cin=Cin, Cout=Cout, KP=KP)

    out = pl.pallas_call(
        kernel,
        out_shape=jax.ShapeDtypeStruct((M, HW), x_nchw.dtype),
        grid_spec=pltpu.PrefetchScalarGridSpec(
            num_scalar_prefetch=0,
            grid=(1,),                                   # whole batch in one step
            in_specs=[
                pl.BlockSpec((NC, HW), lambda i: (0, 0)),
                pl.BlockSpec((M, KP), lambda i: (0, 0)),
            ],
            out_specs=pl.BlockSpec((M, HW), lambda i: (0, 0)),
            scratch_shapes=[pltpu.VMEM((KP, HW), jnp.float32)],   # im2col scratch
        ),
        compiler_params=pltpu.CompilerParams(
            dimension_semantics=("arbitrary",)),
        cost_estimate=pl.CostEstimate(
            flops=2 * M * KP * HW,
            transcendentals=N * Cout * HW,
            bytes_accessed=4 * (NC * HW + M * KP + M * HW)),
    )(x_flat, w_full)

    # Free reshape + slices back to NCHW.
    y = out.reshape(2, N, Cout, H, W)
    loc, scale = y[0], y[1]
    # TODO(synk): torch.distributions.Normal object has no Pallas equivalent;
    # we return its parameters (loc, scale).
    return loc, scale


def _reference(x_nchw, w_mean, b_mean, w_logscale, b_logscale):
    """Pure-JAX reference (explicit PyTorch-style 'same' padding)."""
    KH, KW = w_mean.shape[2], w_mean.shape[3]
    ph, pw = (KH - 1) // 2, (KW - 1) // 2

    def conv(x, w, b):
        y = lax.conv_general_dilated(
            x, w, window_strides=(1, 1), padding=((ph, ph), (pw, pw)),
            dimension_numbers=("NCHW", "OIHW", "NCHW"))
        return y + b.reshape(1, -1, 1, 1)

    mu = conv(x_nchw, w_mean, b_mean)
    logsigma = conv(x_nchw, w_logscale, b_logscale)
    return mu, jnp.exp(logsigma)


if __name__ == "__main__":
    # transform_constructor ~= Conv2d(4, 4, 3, padding=1)
    N, Cin, H, W = 2, 4, 16, 16
    Cout, KH, KW = 4, 3, 3

    key = jax.random.PRNGKey(0)
    k1, k2, k3, k4, k5 = jax.random.split(key, 5)

    x = jax.random.normal(k1, (N, Cin, H, W), jnp.float32)
    w_mean = 0.1 * jax.random.normal(k2, (Cout, Cin, KH, KW), jnp.float32)
    b_mean = 0.1 * jax.random.normal(k3, (Cout,), jnp.float32)
    w_logscale = 0.1 * jax.random.normal(k4, (Cout, Cin, KH, KW), jnp.float32)
    b_logscale = 0.1 * jax.random.normal(k5, (Cout,), jnp.float32)

    loc, scale = normal_distribution_conv_layer(
        x, w_mean, b_mean, w_logscale, b_logscale)
    jax.block_until_ready((loc, scale))

    ref_loc, ref_scale = _reference(x, w_mean, b_mean, w_logscale, b_logscale)
    assert loc.shape == (N, Cout, H, W) and scale.shape == (N, Cout, H, W)
    assert jnp.allclose(loc, ref_loc, atol=1e-4, rtol=1e-4)
    assert jnp.allclose(scale, ref_scale, atol=1e-4, rtol=1e-4)

    print("KERNEL_OK")
</pallas_src>

<mosaic_0001>
module attributes {stable_mosaic.version = 11 : i64} {
  func.func @_normal_conv_kernel(%arg0: i32, %arg1: memref<8x256xf32, #tpu.memory_space<vmem>>, %arg2: memref<16x80xf32, #tpu.memory_space<vmem>>, %arg3: memref<16x256xf32, #tpu.memory_space<vmem>>, %arg4: memref<80x256xf32, #tpu.memory_space<vmem>>) attributes {dimension_semantics = [#tpu.dimension_semantics<arbitrary>], iteration_bounds = array<i64: 1>, scalar_prefetch = 0 : i64, scratch_operands = 1 : i64, tpu.core_type = #tpu.core_type<tc>, window_params = [{pipeline_mode = #tpu.pipeline_mode<synchronous>, transform_indices = @transform_0, window_bounds = array<i64: 8, 256>}, {pipeline_mode = #tpu.pipeline_mode<synchronous>, transform_indices = @transform_1, window_bounds = array<i64: 16, 80>}, {pipeline_mode = #tpu.pipeline_mode<synchronous>, transform_indices = @transform_2, window_bounds = array<i64: 16, 256>}]} {
    %c0 = arith.constant 0 : index
    %c0_0 = arith.constant 0 : index
    %0 = vector.load %arg1[%c0, %c0_0] : memref<8x256xf32, #tpu.memory_space<vmem>>, vector<8x256xf32>
    %1 = tpu.iota {dimensions = array<i32: 1>} : vector<8x256xi32>
    %c15_i32 = arith.constant 15 : i32
    %2 = vector.broadcast %c15_i32 : i32 to vector<8x256xi32>
    %3 = arith.andi %1, %2 : vector<8x256xi32>
    %c1_i32 = arith.constant 1 : i32
    %4 = vector.broadcast %c1_i32 : i32 to vector<8x256xi32>
    %5 = arith.cmpi sge, %3, %4 : vector<8x256xi32>
    %c15_i32_1 = arith.constant 15 : i32
    %6 = vector.broadcast %c15_i32_1 : i32 to vector<8x256xi32>
    %7 = arith.cmpi slt, %3, %6 : vector<8x256xi32>
    %c17_i32 = arith.constant 17 : i32
    %8 = tpu.dynamic_rotate %0 by %c17_i32 dim 1 : vector<8x256xf32>, i32 -> vector<8x256xf32>
    %c17_i32_2 = arith.constant 17 : i32
    %9 = vector.broadcast %c17_i32_2 : i32 to vector<8x256xi32>
    %10 = arith.cmpi sge, %1, %9 : vector<8x256xi32>
    %11 = arith.andi %5, %10 : vector<8x256xi1>
    %cst = arith.constant 0.000000e+00 : f32
    %12 = vector.broadcast %cst : f32 to vector<8x256xf32>
    %13 = arith.select %11, %8, %12 : vector<8x256xi1>, vector<8x256xf32>
    %c0_3 = arith.constant 0 : index
    %c0_4 = arith.constant 0 : index
    %14 = vector.load %arg4[%c0_3, %c0_4] : memref<80x256xf32, #tpu.memory_space<vmem>>, vector<8x256xf32>
    tpu.vector_store %arg4[%c0_3, %c0_4], %13 {strides = array<i32>} : memref<80x256xf32, #tpu.memory_space<vmem>>, vector<8x256xf32>,
    %c16_i32 = arith.constant 16 : i32
    %15 = tpu.dynamic_rotate %0 by %c16_i32 dim 1 : vector<8x256xf32>, i32 -> vector<8x256xf32>
    %c16_i32_5 = arith.constant 16 : i32
    %16 = vector.broadcast %c16_i32_5 : i32 to vector<8x256xi32>
    %17 = arith.cmpi sge, %1, %16 : vector<8x256xi32>
    %cst_6 = arith.constant 0.000000e+00 : f32
    %18 = vector.broadcast %cst_6 : f32 to vector<8x256xf32>
    %19 = arith.select %17, %15, %18 : vector<8x256xi1>, vector<8x256xf32>
    %c8 = arith.constant 8 : index
    %c0_7 = arith.constant 0 : index
    %20 = vector.load %arg4[%c8, %c0_7] : memref<80x256xf32, #tpu.memory_space<vmem>>, vector<8x256xf32>
    tpu.vector_store %arg4[%c8, %c0_7], %19 {strides = array<i32>} : memref<80x256xf32, #tpu.memory_space<vmem>>, vector<8x256xf32>,
    %c15_i32_8 = arith.constant 15 : i32
    %21 = tpu.dynamic_rotate %0 by %c15_i32_8 dim 1 : vector<8x256xf32>, i32 -> vector<8x256xf32>
    %c15_i32_9 = arith.constant 15 : i32
    %22 = vector.broadcast %c15_i32_9 : i32 to vector<8x256xi32>
    %23 = arith.cmpi sge, %1, %22 : vector<8x256xi32>
    %24 = arith.andi %7, %23 : vector<8x256xi1>
    %cst_10 = arith.constant 0.000000e+00 : f32
    %25 = vector.broadcast %cst_10 : f32 to vector<8x256xf32>
    %26 = arith.select %24, %21, %25 : vector<8x256xi1>, vector<8x256xf32>
    %c16 = arith.constant 16 : index
    %c0_11 = arith.constant 0 : index
    %27 = vector.load %arg4[%c16, %c0_11] : memref<80x256xf32, #tpu.memory_space<vmem>>, vector<8x256xf32>
    tpu.vector_store %arg4[%c16, %c0_11], %26 {strides = array<i32>} : memref<80x256xf32, #tpu.memory_space<vmem>>, vector<8x256xf32>,
    %c1_i32_12 = arith.constant 1 : i32
    %28 = tpu.dynamic_rotate %0 by %c1_i32_12 dim 1 : vector<8x256xf32>, i32 -> vector<8x256xf32>
    %c1_i32_13 = arith.constant 1 : i32
    %29 = vector.broadcast %c1_i32_13 : i32 to vector<8x256xi32>
    %30 = arith.cmpi sge, %1, %29 : vector<8x256xi32>
    %31 = arith.andi %5, %30 : vector<8x256xi1>
    %cst_14 = arith.constant 0.000000e+00 : f32
    %32 = vector.broadcast %cst_14 : f32 to vector<8x256xf32>
    %33 = arith.select %31, %28, %32 : vector<8x256xi1>, vector<8x256xf32>
    %c24 = arith.constant 24 : index
    %c0_15 = arith.constant 0 : index
    %34 = vector.load %arg4[%c24, %c0_15] : memref<80x256xf32, #tpu.memory_space<vmem>>, vector<8x256xf32>
    tpu.vector_store %arg4[%c24, %c0_15], %33 {strides = array<i32>} : memref<80x256xf32, #tpu.memory_space<vmem>>, vector<8x256xf32>,
    %c32 = arith.constant 32 : index
    %c0_16 = arith.constant 0 : index
    %35 = vector.load %arg4[%c32, %c0_16] : memref<80x256xf32, #tpu.memory_space<vmem>>, vector<8x256xf32>
    tpu.vector_store %arg4[%c32, %c0_16], %0 {strides = array<i32>} : memref<80x256xf32, #tpu.memory_space<vmem>>, vector<8x256xf32>,
    %c255_i32 = arith.constant 255 : i32
    %36 = tpu.dynamic_rotate %0 by %c255_i32 dim 1 : vector<8x256xf32>, i32 -> vector<8x256xf32>
    %c255_i32_17 = arith.constant 255 : i32
    %37 = vector.broadcast %c255_i32_17 : i32 to vector<8x256xi32>
    %38 = arith.cmpi slt, %1, %37 : vector<8x256xi32>
    %39 = arith.andi %7, %38 : vector<8x256xi1>
    %cst_18 = arith.constant 0.000000e+00 : f32
    %40 = vector.broadcast %cst_18 : f32 to vector<8x256xf32>
    %41 = arith.select %39, %36, %40 : vector<8x256xi1>, vector<8x256xf32>
    %c40 = arith.constant 40 : index
    %c0_19 = arith.constant 0 : index
    %42 = vector.load %arg4[%c40, %c0_19] : memref<80x256xf32, #tpu.memory_space<vmem>>, vector<8x256xf32>
    tpu.vector_store %arg4[%c40, %c0_19], %41 {strides = array<i32>} : memref<80x256xf32, #tpu.memory_space<vmem>>, vector<8x256xf32>,
    %c241_i32 = arith.constant 241 : i32
    %43 = tpu.dynamic_rotate %0 by %c241_i32 dim 1 : vector<8x256xf32>, i32 -> vector<8x256xf32>
    %c241_i32_20 = arith.constant 241 : i32
    %44 = vector.broadcast %c241_i32_20 : i32 to vector<8x256xi32>
    %45 = arith.cmpi slt, %1, %44 : vector<8x256xi32>
    %46 = arith.andi %5, %45 : vector<8x256xi1>
    %cst_21 = arith.constant 0.000000e+00 : f32
    %47 = vector.broadcast %cst_21 : f32 to vector<8x256xf32>
    %48 = arith.select %46, %43, %47 : vector<8x256xi1>, vector<8x256xf32>
    %c48 = arith.constant 48 : index
    %c0_22 = arith.constant 0 : index
    %49 = vector.load %arg4[%c48, %c0_22] : memref<80x256xf32, #tpu.memory_space<vmem>>, vector<8x256xf32>
    tpu.vector_store %arg4[%c48, %c0_22], %48 {strides = array<i32>} : memref<80x256xf32, #tpu.memory_space<vmem>>, vector<8x256xf32>,
    %c240_i32 = arith.constant 240 : i32
    %50 = tpu.dynamic_rotate %0 by %c240_i32 dim 1 : vector<8x256xf32>, i32 -> vector<8x256xf32>
    %c240_i32_23 = arith.constant 240 : i32
    %51 = vector.broadcast %c240_i32_23 : i32 to vector<8x256xi32>
    %52 = arith.cmpi slt, %1, %51 : vector<8x256xi32>
    %cst_24 = arith.constant 0.000000e+00 : f32
    %53 = vector.broadcast %cst_24 : f32 to vector<8x256xf32>
    %54 = arith.select %52, %50, %53 : vector<8x256xi1>, vector<8x256xf32>
    %c56 = arith.constant 56 : index
    %c0_25 = arith.constant 0 : index
    %55 = vector.load %arg4[%c56, %c0_25] : memref<80x256xf32, #tpu.memory_space<vmem>>, vector<8x256xf32>
    tpu.vector_store %arg4[%c56, %c0_25], %54 {strides = array<i32>} : memref<80x256xf32, #tpu.memory_space<vmem>>, vector<8x256xf32>,
    %c239_i32 = arith.constant 239 : i32
    %56 = tpu.dynamic_rotate %0 by %c239_i32 dim 1 : vector<8x256xf32>, i32 -> vector<8x256xf32>
    %c239_i32_26 = arith.constant 239 : i32
    %57 = vector.broadcast %c239_i32_26 : i32 to vector<8x256xi32>
    %58 = arith.cmpi slt, %1, %57 : vector<8x256xi32>
    %59 = arith.andi %7, %58 : vector<8x256xi1>
    %cst_27 = arith.constant 0.000000e+00 : f32
    %60 = vector.broadcast %cst_27 : f32 to vector<8x256xf32>
    %61 = arith.select %59, %56, %60 : vector<8x256xi1>, vector<8x256xf32>
    %c64 = arith.constant 64 : index
    %c0_28 = arith.constant 0 : index
    %62 = vector.load %arg4[%c64, %c0_28] : memref<80x256xf32, #tpu.memory_space<vmem>>, vector<8x256xf32>
    tpu.vector_store %arg4[%c64, %c0_28], %61 {strides = array<i32>} : memref<80x256xf32, #tpu.memory_space<vmem>>, vector<8x256xf32>,
    %63 = tpu.iota {dimensions = array<i32: 0>} : vector<8x256xi32>
    %c0_i32 = arith.constant 0 : i32
    %64 = vector.broadcast %c0_i32 : i32 to vector<8x256xi32>
    %65 = arith.cmpi eq, %63, %64 : vector<8x256xi32>
    %66 = arith.extui %65 : vector<8x256xi1> to vector<8x256xi32>
    %67 = arith.sitofp %66 : vector<8x256xi32> to vector<8x256xf32>
    %c72 = arith.constant 72 : index
    %c0_29 = arith.constant 0 : index
    %68 = vector.load %arg4[%c72, %c0_29] : memref<80x256xf32, #tpu.memory_space<vmem>>, vector<8x256xf32>
    tpu.vector_store %arg4[%c72, %c0_29], %67 {strides = array<i32>} : memref<80x256xf32, #tpu.memory_space<vmem>>, vector<8x256xf32>,
    %c0_30 = arith.constant 0 : index
    %c0_31 = arith.constant 0 : index
    %69 = vector.load %arg2[%c0_30, %c0_31] : memref<16x80xf32, #tpu.memory_space<vmem>>, vector<16x80xf32>
    %c0_32 = arith.constant 0 : index
    %c0_33 = arith.constant 0 : index
    %70 = vector.load %arg4[%c0_32, %c0_33] : memref<80x256xf32, #tpu.memory_space<vmem>>, vector<80x256xf32>
    %cst_34 = arith.constant dense<0.000000e+00> : vector<16x256xf32>
    %71 = tpu.matmul %69, %70, %cst_34 {dimension_numbers = #tpu.dot_dimension_numbers<[1], [0], [0], [1], [0, 0, 1, 1], [], []>} : vector<16x80xf32>, vector<80x256xf32>, vector<16x256xf32> -> vector<16x256xf32>
    %72 = vector.extract_strided_slice %71 {offsets = [0, 0], sizes = [8, 256], strides = [1, 1]} : vector<16x256xf32> to vector<8x256xf32>
    %c0_35 = arith.constant 0 : index
    %c0_36 = arith.constant 0 : index
    %73 = vector.load %arg3[%c0_35, %c0_36] : memref<16x256xf32, #tpu.memory_space<vmem>>, vector<8x256xf32>
    tpu.vector_store %arg3[%c0_35, %c0_36], %72 {strides = array<i32>} : memref<16x256xf32, #tpu.memory_space<vmem>>, vector<8x256xf32>,
    %74 = vector.extract_strided_slice %71 {offsets = [8, 0], sizes = [8, 256], strides = [1, 1]} : vector<16x256xf32> to vector<8x256xf32>
    %75 = math.exp %74 : vector<8x256xf32>
    %c8_37 = arith.constant 8 : index
    %c0_38 = arith.constant 0 : index
    %76 = vector.load %arg3[%c8_37, %c0_38] : memref<16x256xf32, #tpu.memory_space<vmem>>, vector<8x256xf32>
    tpu.vector_store %arg3[%c8_37, %c0_38], %75 {strides = array<i32>} : memref<16x256xf32, #tpu.memory_space<vmem>>, vector<8x256xf32>,
    return
  }
  func.func @transform_0(%arg0: i32) -> (i32, i32) {
    %c0_i32 = arith.constant 0 : i32
    %c0_i32_0 = arith.constant 0 : i32
    %c0_i32_1 = arith.constant 0 : i32
    return %c0_i32, %c0_i32_0 : i32, i32
  }
  func.func @transform_1(%arg0: i32) -> (i32, i32) {
    %c0_i32 = arith.constant 0 : i32
    %c0_i32_0 = arith.constant 0 : i32
    %c0_i32_1 = arith.constant 0 : i32
    return %c0_i32, %c0_i32_0 : i32, i32
  }
  func.func @transform_2(%arg0: i32) -> (i32, i32) {
    %c0_i32 = arith.constant 0 : i32
    %c0_i32_0 = arith.constant 0 : i32
    %c0_i32_1 = arith.constant 0 : i32
    return %c0_i32, %c0_i32_0 : i32, i32
  }
}

</mosaic_0001>

<bundles_post_ra>
// kernel: tpu_custom_call.1
= control target key start
LH: loop header
LB: loop body
LE: loop exit
PB: predicated region body
PF: predicated region fallthrough
CT: control target
= control target key end

     0   :  { %7 = vsyncpa [#allocation4], 0  ;;  %s570_s0 = inlined_call_operand.hbm [shape: f32[8,256], index: 0, kind: input, shape index: {}]   ;;  %s571_s1 = inlined_call_operand.hbm [shape: f32[16,80], index: 1, kind: input, shape index: {}]   ;;  %s572_s2 = inlined_call_operand.hbm [shape: f32[16,256], index: 2, kind: output, shape index: {}]  }
   0x1   :  { %8 = vsyncpa [#allocation7], 0 }
   0x2   :  { %9 = vsyncpa [#allocation5], 0  ;;  %s431_s9 = smov [#allocation3]   ;;  %s432_s11 = smov [#allocation6]  }
   0x3   :  { %s16_s10 = sshll.u32 %s431_s9, 4  ;;  %s25_s12 = sshll.u32 %s432_s11, 4  ;;  %s17_s10 = int_to_ptr.vmem [resolvable:$true] %s16_s10  ;;  %s26_s12 = int_to_ptr.vmem [resolvable:$true] %s25_s12 }
   0x4   :  { %s373_s13 = scalar_lea.vmem %s17_s10, 256  ;;  %p378_p1 = scmp.lt.s32.totalorder %s17_s10, %s17_s10 }
   0x5   :  { %p374_p0 = scmp.ne.s32.totalorder %s17_s10, %s373_s13  ;;  %p379_p2 = scmp.lt.s32.totalorder %s373_s13, %s373_s13 }
   0x7   :  { %p380_p3 = por %p379_p2, %p378_p1 }
   0x9   :  { %p381_p4 = pnand %p380_p3, %p374_p0 }
   0xb   :  { %384 = shalt.err (!%p381_p4)
}
   0xc   :  { %19 = dma.hbm_to_vmem [thread:$0]  %s570_s0, 256, %s17_s10, [#allocation4]  }
   0xd   :  { %s393_s16 = scalar_lea.vmem %s26_s12, 256  ;;  %p398_p6 = scmp.lt.s32.totalorder %s26_s12, %s26_s12 }
   0xe   :  { %p394_p5 = scmp.ne.s32.totalorder %s26_s12, %s393_s16  ;;  %p399_p7 = scmp.lt.s32.totalorder %s393_s16, %s393_s16 }
  0x10   :  { %p400_p8 = por %p399_p7, %p398_p6 }
  0x12   :  { %p401_p9 = pnand %p400_p8, %p394_p5 }
  0x14   :  { %404 = shalt.err (!%p401_p9)
}
  0x15   :  { %s433_s17 = smov 128   ;;  %s434_s18 = smov 8  }
  0x16   :  { %31 = dma.hbm_to_vmem [thread:$0]  %s571_s1, 256, %s26_s12, [#allocation7], %s433_s17, %s433_s17, %s434_s18  }
  0x17   :  { %425 = dma.done.wait [#allocation4], 256  }
  0x18   :  { %426 = vsyncadd [#allocation4], 4294967040 }
  0x19   :  { %427 = dma.done.wait [#allocation7], 256  }
  0x1a   :  { %428 = vsyncadd [#allocation7], 4294967040  ;;  %v40_v0 = vlaneseq  ;;  %v435_v2 = vmov 1.0   ;;  %v468_v3 = vld [vmem:[#allocation3] sm:$0xff]  ;;  %s436_s0 = smov 112   ;;  %s437_s21 = smov 111  }
  0x1b   :  { %139 = vrot.lane.b32.xlu1 %v468_v3, %s436_s0  ;;  %152 = vrot.lane.b32.xlu0 %v468_v3, %s437_s21  ;;  %v472_v4 = vld [vmem:[#allocation3 + $0x8] sm:$0xff]  ;;  %s438_s1 = smov 113   ;;  %s439_s22 = smov 127   ;;  %v441_v5 = vmov 0.0   ;;  %v175_v46 = vld [vmem:[#allocation6 + $0x8] sm:$0xff]  ;;  %v174_v47 = vld [vmem:[#allocation6] sm:$0xff] }
  0x1c   :  { %v168_v1 = vshrl.u32 %v40_v0, 7  ;;  %s440_s23 = smov 1   ;;  %273 = vmatprep.mubr.f32.mxu1 %v441_v5  ;;  %267 = vmatprep.mubr.f32.mxu0 %v441_v5  ;;  %s442_s24 = smov 15   ;;  %v490_v6 = vand.u32 127, %v40_v0 }
  0x1d   :  { %s443_s25 = smov 16   ;;  %s444_s26 = smov 17  }
  0x1e   :  { %vm169_vm0 = vcmp.eq.s32.totalorder %v168_v1, 0  ;;  %v42_v7 = vadd.s32 128, %v490_v6  ;;  %v43_v12 = vand.u32 15, %v490_v6  ;;  %vm156_vm3 = vcmp.lt.s32.totalorder %v490_v6, 111  ;;  %s445_s27 = smov [#allocation8]  }
  0x1f   :  { %309 = vmatprep.subr.msk.mxu0 %vm169_vm0, %v435_v2  ;;  %325 = vmatprep.subr.msk.mxu1 %vm169_vm0, %v435_v2  ;;  %vm143_vm5 = vcmp.lt.s32.totalorder %v490_v6, 112  ;;  %vm128_vm10 = vcmp.lt.s32.totalorder %v490_v6, 113  ;;  %vm113_vm14 = vcmp.lt.s32.totalorder %v490_v6, 127  ;;  %s293_s28 = sshll.u32 %s445_s27, 4  ;;  %s294_s28 = int_to_ptr.vmem [resolvable:$true] %s293_s28 }
  0x20   :  { %310 = vmatpush1.msk.msra.mxu0 %vm169_vm0, %v435_v2  ;;  %335 = vmatpush1.msk.msra.mxu1 %vm169_vm0, %v435_v2  ;;  %v44_v8 = vand.u32 15, %v42_v7  ;;  %vm160_vm2 = vcmp.lt.s32.totalorder %v42_v7, 239  ;;  %vm502_vm6 = vcmp.lt.s32.totalorder %v43_v12, 15  ;;  %vm132_vm8 = vcmp.lt.s32.totalorder %v42_v7, 241  ;;  %s405_s29 = scalar_lea.vmem %s294_s28, 512  ;;  %p410_p11 = scmp.lt.s32.totalorder %s294_s28, %s294_s28 }
  0x21   :  { %141 = vrot.lane.b32.xlu1 %v472_v4, %s436_s0  ;;  %154 = vrot.lane.b32.xlu0 %v472_v4, %s437_s21  ;;  %vm147_vm9 = vcmp.lt.s32.totalorder %v42_v7, 240  ;;  %vm521_vm12 = vcmp.ge.s32.totalorder %v43_v12, 1  ;;  %vm117_vm13 = vcmp.lt.s32.totalorder %v42_v7, 255  ;;  %vm99_vm0 = vcmp.ge.s32.totalorder %v490_v6, 1  ;;  %p406_p10 = scmp.ne.s32.totalorder %s294_s28, %s405_s29  ;;  %p411_p12 = scmp.lt.s32.totalorder %s405_s29, %s405_s29 }
  0x22   :  { %vm493_vm1 = vcmp.lt.s32.totalorder %v44_v8, 15  ;;  %vm506_vm7 = vcmp.ge.s32.totalorder %v44_v8, 1 }
  0x23   :  { %vm162_vm4 = vmand %vm493_vm1, %vm160_vm2  ;;  %vm96_vm2 = vcmp.lt.s32.totalorder %v490_v6, 1  ;;  %p412_p13 = por %p411_p12, %p410_p11 }
  0x24   :  { %vm134_vm11 = vmand %vm506_vm7, %vm132_vm8 }
  0x25   :  { %126 = vrot.lane.b32.xlu1 %v472_v4, %s438_s1  ;;  %124 = vrot.lane.b32.xlu0 %v468_v3, %s438_s1  ;;  %vm119_vm15 = vmand %vm493_vm1, %vm117_vm13  ;;  %vm196_vm13 = vcmask 654336   ;;  %p413_p0 = pnand %p412_p13, %p406_p10 }
  0x29   :  { %111 = vrot.lane.b32.xlu1 %v472_v4, %s439_s22  ;;  %109 = vrot.lane.b32.xlu0 %v468_v3, %s439_s22 }
  0x2d   :  { %94 = vrot.lane.b32.xlu1 %v472_v4, %s440_s23  ;;  %92 = vrot.lane.b32.xlu0 %v468_v3, %s440_s23 }
  0x31   :  { %79 = vrot.lane.b32.xlu1 %v472_v4, %s442_s24  ;;  %77 = vrot.lane.b32.xlu0 %v468_v3, %s442_s24 }
  0x35   :  { %66 = vrot.lane.b32.xlu1 %v472_v4, %s443_s25  ;;  %64 = vrot.lane.b32.xlu0 %v468_v3, %s443_s25 }
  0x39   :  { %51 = vrot.lane.b32.xlu1 %v472_v4, %s444_s26  ;;  %49 = vrot.lane.b32.xlu0 %v468_v3, %s444_s26 }
  0x8d   :  { %v140_v9 = vpop.permute.xlu1 %139  ;;  %v153_v10 = vpop.permute.xlu0 %152 }
  0x93   :  { %v142_v13 = vpop.permute.xlu1 %141  ;;  %v155_v14 = vpop.permute.xlu0 %154 }
  0x94   :  { %v157_v17 = vsel %vm156_vm3, %v153_v10, %v155_v14  ;;  %v158_v18 = vsel %vm156_vm3, %v155_v14, %v153_v10  ;;  %v145_v19 = vsel %vm143_vm5, %v142_v13, %v140_v9  ;;  %v144_v22 = vsel %vm143_vm5, %v140_v9, %v142_v13  ;;  %vm101_vm3 = vmand %vm521_vm12, %vm99_vm0 }
  0x95   :  { %311 = vmatprep.subr.msk.mxu0 %vm162_vm4, %v158_v18  ;;  %326 = vmatprep.subr.msk.mxu1 %vm162_vm4, %v158_v18  ;;  %vm84_vm4 = vcmp.ge.s32.totalorder %v490_v6, 15  ;;  %vm81_vm5 = vcmp.lt.s32.totalorder %v490_v6, 15 }
  0x96   :  { %312 = vmatpush1.msk.msra.mxu0 %vm502_vm6, %v157_v17  ;;  %336 = vmatpush1.msk.msra.mxu1 %vm502_vm6, %v157_v17  ;;  %vm86_vm8 = vmand %vm502_vm6, %vm84_vm4 }
  0x97   :  { %v127_v20 = vpop.permute.xlu1 %126  ;;  %313 = vmatprep.subr.msk.mxu0 %vm147_vm9, %v145_v19  ;;  %327 = vmatprep.subr.msk.mxu1 %vm147_vm9, %v145_v19  ;;  %v125_v21 = vpop.permute.xlu0 %124  ;;  %vm68_vm9 = vcmp.lt.s32.totalorder %v490_v6, 16 }
  0x98   :  { %v129_v24 = vsel %vm128_vm10, %v125_v21, %v127_v20  ;;  %v130_v25 = vsel %vm128_vm10, %v127_v20, %v125_v21  ;;  %220 = vmatpush1.msra.mxu0 %v144_v22  ;;  %337 = vmatpush1.msra.mxu1 %v144_v22  ;;  %vm71_vm10 = vcmp.ge.s32.totalorder %v490_v6, 16 }
  0x99   :  { %314 = vmatprep.subr.msk.mxu0 %vm134_vm11, %v130_v25  ;;  %328 = vmatprep.subr.msk.mxu1 %vm134_vm11, %v130_v25  ;;  %vm53_vm11 = vcmp.lt.s32.totalorder %v490_v6, 17 }
  0x9a   :  { %315 = vmatpush1.msk.msra.mxu0 %vm521_vm12, %v129_v24  ;;  %338 = vmatpush1.msk.msra.mxu1 %vm521_vm12, %v129_v24 }
  0x9b   :  { %v112_v26 = vpop.permute.xlu1 %111  ;;  %v110_v27 = vpop.permute.xlu0 %109 }
  0x9c   :  { %v114_v28 = vsel %vm113_vm14, %v110_v27, %v112_v26  ;;  %v115_v29 = vsel %vm113_vm14, %v112_v26, %v110_v27 }
  0x9d   :  { %316 = vmatprep.subr.msk.mxu0 %vm119_vm15, %v115_v29  ;;  %329 = vmatprep.subr.msk.mxu1 %vm119_vm15, %v115_v29 }
  0x9e   :  { %317 = vmatpush1.msk.msra.mxu0 %vm502_vm6, %v114_v28  ;;  %339 = vmatpush1.msk.msra.mxu1 %vm502_vm6, %v114_v28  ;;  %vm56_vm6 = vcmp.ge.s32.totalorder %v490_v6, 17 }
  0x9f   :  { %v95_v30 = vpop.permute.xlu1 %94  ;;  %225 = vmatprep.subr.mxu0 %v472_v4  ;;  %330 = vmatprep.subr.mxu1 %v472_v4  ;;  %v93_v31 = vpop.permute.xlu0 %92 }
  0xa0   :  { %v97_v32 = vsel %vm96_vm2, %v93_v31, %v95_v30  ;;  %v98_v33 = vsel %vm96_vm2, %v95_v30, %v93_v31  ;;  %226 = vmatpush1.msra.mxu0 %v468_v3  ;;  %340 = vmatpush1.msra.mxu1 %v468_v3 }
  0xa1   :  { %318 = vmatprep.subr.msk.mxu0 %vm506_vm7, %v97_v32  ;;  %331 = vmatprep.subr.msk.mxu1 %vm506_vm7, %v97_v32 }
  0xa2   :  { %319 = vmatpush1.msk.msra.mxu0 %vm101_vm3, %v98_v33  ;;  %341 = vmatpush1.msk.msra.mxu1 %vm101_vm3, %v98_v33 }
  0xa3   :  { %v80_v34 = vpop.permute.xlu1 %79  ;;  %v78_v35 = vpop.permute.xlu0 %77 }
  0xa4   :  { %v82_v36 = vsel %vm81_vm5, %v78_v35, %v80_v34  ;;  %v83_v37 = vsel %vm81_vm5, %v80_v34, %v78_v35 }
  0xa5   :  { %320 = vmatprep.subr.msk.mxu0 %vm493_vm1, %v82_v36  ;;  %332 = vmatprep.subr.msk.mxu1 %vm493_vm1, %v82_v36  ;;  %vm58_vm1 = vmand %vm521_vm12, %vm56_vm6 }
  0xa6   :  { %321 = vmatpush1.msk.msra.mxu0 %vm86_vm8, %v83_v37  ;;  %342 = vmatpush1.msk.msra.mxu1 %vm86_vm8, %v83_v37 }
  0xa7   :  { %v67_v38 = vpop.permute.xlu1 %66  ;;  %v65_v39 = vpop.permute.xlu0 %64 }
  0xa8   :  { %v70_v40 = vsel %vm68_vm9, %v67_v38, %v65_v39  ;;  %v69_v41 = vsel %vm68_vm9, %v65_v39, %v67_v38 }
  0xa9   :  { %231 = vmatprep.subr.mxu0 %v69_v41  ;;  %333 = vmatprep.subr.mxu1 %v69_v41 }
  0xaa   :  { %322 = vmatpush1.msk.msra.mxu0 %vm71_vm10, %v70_v40  ;;  %343 = vmatpush1.msk.msra.mxu1 %vm71_vm10, %v70_v40 }
  0xab   :  { %v52_v42 = vpop.permute.xlu1 %51  ;;  %v50_v43 = vpop.permute.xlu0 %49 }
  0xac   :  { %v54_v44 = vsel %vm53_vm11, %v50_v43, %v52_v42  ;;  %v55_v45 = vsel %vm53_vm11, %v52_v42, %v50_v43 }
  0xad   :  { %323 = vmatprep.subr.msk.mxu0 %vm506_vm7, %v54_v44  ;;  %334 = vmatprep.subr.msk.mxu1 %vm506_vm7, %v54_v44 }
  0xae   :  { %324 = vmatpush1.msk.msra.mxu0 %vm58_vm1, %v55_v45  ;;  %344 = vmatpush1.msk.msra.mxu1 %vm58_vm1, %v55_v45 }
  0xaf   :  { %308 = vmatmul.mubr.msk.f32.vlgmr.msra.gmra.mxu1 %vm196_vm13, %v175_v46  ;;  %307 = vmatmul.mubr.msk.f32.vlgmr.msra.gmra.mxu0 %vm196_vm13, %v174_v47 }
 0x16f   :  { %v275_v48 = vpop.f32.mrf.mxu1  ;;  %v269_v49 = vpop.f32.mrf.mxu0 }
 0x170   :  { %v282_v50 = vmul.f32 1.442695, %v275_v48  ;;  %280 = vst [vmem:[#allocation8] sm:$0xff] %v269_v49 }
 0x171   :  { %v277_v51 = vpop.f32.mrf.mxu1  ;;  %v271_v52 = vpop.f32.mrf.mxu0 }
 0x172   :  { %361 = vpow2.f32 %v282_v50  ;;  %v284_v53 = vmul.f32 1.442695, %v277_v51  ;;  %281 = vst [vmem:[#allocation8 + $0x8] sm:$0xff] %v271_v52 }
 0x174   :  { %363 = vpow2.f32 %v284_v53 }
 0x17f   :  { %v362_v54 = vpop.eup %361 }
 0x180   :  { %286 = vst [vmem:[#allocation8 + $0x10] sm:$0xff] %v362_v54 }
 0x181   :  { %v364_v55 = vpop.eup %363 }
 0x182   :  { %287 = vst [vmem:[#allocation8 + $0x18] sm:$0xff] %v364_v55 }
 0x183   :  { %416 = shalt.err (!%p413_p0)
}
 0x184   :  { %s446_s30 = smov 256  }
 0x185   :  { %299 = dma.vmem_to_hbm [thread:$0]  %s294_s28, 512, %s572_s2, [#allocation5], %s446_s30, %s446_s30, %s443_s25  }
 0x186   :  { %429 = dma.done.wait [#allocation5], 512  }
 0x187   :  { %430 = vsyncadd [#allocation5], 4294966784 }
 0x188   :  { %303 = vsyncpa [#allocation4], 1 }
 0x189   :  { %304 = vsyncpa [#allocation7], 1 }
 0x18a   :  { %305 = vsyncpa [#allocation5], 1 }

</bundles_post_ra>
